<compile_context>
chip_gen: v7x
topology: tpu7x:2x2x1
jax: 0.10.0
libtpu: 0.0.40
codegen_flags: <defaults>
</compile_context>

<pallas_src>
import functools
import math

import jax
import jax.numpy as jnp
from jax.experimental import pallas as pl
from jax.experimental.pallas import tpu as pltpu

_HALO = 128  # halo width (lanes) on each side of an L tile


def _round_up(v, m):
    return ((v + m - 1) // m) * m


# ----------------------------------------------------------------------------
# Fused kernel: all bottleneck blocks + masked average pool + linear_out
# ----------------------------------------------------------------------------
def _fused_kernel(len_ref, xl_ref, xc_ref, xr_ref, *args,
                  kernel_sizes, tile, seq_axis_len, num_blocks):
    n_w = 4 * num_blocks + 2
    w_refs = args[:n_w]
    o_ref = args[n_w]
    acc_ref = args[n_w + 1]

    b = pl.program_id(0)
    t = pl.program_id(1)
    n_t = pl.num_programs(1)

    seq_len = len_ref[b]                                    # f32 scalar (SMEM)

    # Haloed channels-first slab: (C_in, 128 + TILE + 128), bf16.
    slab = jnp.concatenate([xl_ref[0], xc_ref[0], xr_ref[0]], axis=-1)
    ls = tile + 2 * _HALO

    # Global sequence position of every lane column of the slab.
    pos = jax.lax.broadcasted_iota(jnp.int32, (1, ls), 1) + t * tile - _HALO
    # 'extent' emulates Conv1d 'same' zero padding outside [0, L) (and kills the
    # clamped halo copies at the sequence edges); 'valid' is the per-batch
    # masked_fill(mask, 0) applied after every dense block.
    extent = ((pos >= 0) & (pos < seq_axis_len)).astype(jnp.float32)
    valid = ((pos >= 0) &
             (pos.astype(jnp.float32) < seq_len)).astype(jnp.float32)

    cur = slab                                              # bf16 (C, LS)
    y = None
    for blk in range(num_blocks):
        w1 = w_refs[4 * blk + 0][...]                       # (Cmid, Cin)    bf16
        b1 = w_refs[4 * blk + 1][...]                       # (Cmid, 1)      f32
        w2 = w_refs[4 * blk + 2][...]                       # (Cout, K*Cmid) bf16
        b2 = w_refs[4 * blk + 3][...]                       # (Cout, 1)      f32
        k_size = kernel_sizes[blk]
        pad_lo = (k_size - 1) // 2

        # 1x1 bottleneck conv + ReLU (channels-first matmul, f32 accumulation).
        h = jnp.dot(w1, cur, preferred_element_type=jnp.float32)
        h = jnp.maximum(h + b1, 0.0)
        h = h * extent                                      # conv zero-pad emulation

        # K-tap conv as im2col: K static lane rolls (XLU) stacked on the sublane
        # axis, then ONE matmul with contraction K*Cmid.
        taps = []
        for k in range(k_size):
            sh = (pad_lo - k) % ls
            taps.append(h if sh == 0 else pltpu.roll(h, shift=sh, axis=1))
        stacked = jnp.concatenate(taps, axis=0).astype(jnp.bfloat16)
        y = jnp.dot(w2, stacked, preferred_element_type=jnp.float32)
        y = jnp.maximum(y + b2, 0.0)
        y = y * valid                                       # masked_fill(mask, 0)
        cur = y.astype(jnp.bfloat16)

    # ---- fused head: masked average pool + linear_out ------------------------
    w_out = w_refs[n_w - 2][...]                            # (C_last, N) f32
    b_out = w_refs[n_w - 1][...]                            # (1, N)      f32

    central = y[:, _HALO:_HALO + tile]                      # (C_last, TILE) f32

    @pl.when(t == 0)
    def _():
        acc_ref[...] = jnp.zeros_like(acc_ref)

    acc_ref[...] += jnp.sum(central, axis=-1, keepdims=True)

    @pl.when(t == n_t - 1)
    def _():
        pooled = acc_ref[...] / seq_len                     # (C_last, 1)
        logits = jnp.sum(pooled * w_out, axis=0, keepdims=True)   # (1, N)
        o_ref[0] = (logits + b_out).astype(o_ref.dtype)


# ----------------------------------------------------------------------------
# Wrapper: layout plumbing + pallas_call
# ----------------------------------------------------------------------------
def densenet_forward(params, x, seq_lengths, *, max_tile=512):
    """x: (B, L, C_in) float32, seq_lengths: (B,) -> ((B, num_class), None)."""
    B, L, _ = x.shape
    blocks = params["blocks"]
    num_blocks = len(blocks)
    kernel_sizes = tuple(int(w2.shape[0]) for (_, _, w2, _) in blocks)
    w_out, b_out = params["linear_out"]
    c_last, n_cls = w_out.shape

    # in_layer = Dropout1d -> identity at inference; permute to channels-first
    # (lane-dense L), pad L to a multiple of the tile, cast matmul inputs to bf16.
    xt = jnp.transpose(x, (0, 2, 1))                        # (B, Cin, L)
    tile = min(max_tile, _round_up(L, 128))
    lp = _round_up(L, tile)
    if lp != L:
        xt = jnp.pad(xt, ((0, 0), (0, 0), (0, lp - L)))
    xt = xt.astype(jnp.bfloat16)
    cin = xt.shape[1]
    n_t = lp // tile
    n_sub = tile // _HALO                 # 128-lane blocks per tile
    last_halo_blk = lp // _HALO - 1

    # Kernel-ready weights: channels-first 1x1 weight, im2col-flattened conv taps,
    # bf16 matmul operands, f32 biases as (C, 1) columns.
    flat_w = []
    for (w1, b1, w2, b2) in blocks:
        k, cmid, cout = w2.shape
        w2t = jnp.transpose(w2, (2, 0, 1)).reshape(cout, k * cmid)
        flat_w += [w1.astype(jnp.bfloat16),
                   b1.reshape(-1, 1).astype(jnp.float32),
                   w2t.astype(jnp.bfloat16),
                   b2.reshape(-1, 1).astype(jnp.float32)]
    flat_w += [w_out.astype(jnp.float32), b_out.reshape(1, -1).astype(jnp.float32)]

    w_specs = [pl.BlockSpec(w.shape, lambda bb, tt, *_: (0, 0)) for w in flat_w]

    in_specs = [
        # left 128-lane halo, clamped at the start of the sequence
        pl.BlockSpec((1, cin, _HALO),
                     lambda bb, tt, *_: (bb, 0, jnp.maximum(tt * n_sub - 1, 0))),
        # center tile
        pl.BlockSpec((1, cin, tile), lambda bb, tt, *_: (bb, 0, tt)),
        # right 128-lane halo, clamped at the padded end
        pl.BlockSpec((1, cin, _HALO),
                     lambda bb, tt, *_: (bb, 0, jnp.minimum((tt + 1) * n_sub,
                                                            last_halo_blk))),
    ] + w_specs

    kern = functools.partial(
        _fused_kernel,
        kernel_sizes=kernel_sizes,
        tile=tile,
        seq_axis_len=L,
        num_blocks=num_blocks,
    )

    grid_spec = pltpu.PrefetchScalarGridSpec(
        num_scalar_prefetch=1,
        grid=(B, n_t),
        in_specs=in_specs,
        out_specs=pl.BlockSpec((1, 1, n_cls), lambda bb, tt, *_: (bb, 0, 0)),
        scratch_shapes=[pltpu.VMEM((c_last, 1), jnp.float32)],
    )

    out = pl.pallas_call(
        kern,
        out_shape=jax.ShapeDtypeStruct((B, 1, n_cls), jnp.float32),
        grid_spec=grid_spec,
        compiler_params=pltpu.CompilerParams(
            dimension_semantics=("parallel", "arbitrary"),
            vmem_limit_bytes=32 * 1024 * 1024),
    )(seq_lengths.reshape(-1).astype(jnp.float32), xt, xt, xt, *flat_w)

    return out.reshape(B, n_cls), None


# ----------------------------------------------------------------------------
# Parameter init (deterministic, synthetic)
# ----------------------------------------------------------------------------
def init_params(key, input_dim, num_of_class, kernel_sizes, conv_channels,
                factor_block):
    params = {"blocks": []}
    cin = input_dim
    for ks, cc in zip(kernel_sizes, conv_channels):
        cmid = factor_block * cc
        key, k1, k2 = jax.random.split(key, 3)
        w1 = jax.random.normal(k1, (cmid, cin), jnp.float32) / math.sqrt(cin)
        b1 = jnp.zeros((cmid,), jnp.float32)
        w2 = jax.random.normal(k2, (ks, cmid, cc), jnp.float32) / math.sqrt(cmid * ks)
        b2 = jnp.zeros((cc,), jnp.float32)
        params["blocks"].append((w1, b1, w2, b2))
        cin = cc
    key, kw = jax.random.split(key)
    std = math.sqrt(2.0 / (cin + num_of_class))              # xavier normal
    w_out = jax.random.normal(kw, (cin, num_of_class), jnp.float32) * std
    b_out = jnp.full((num_of_class,), 0.01, jnp.float32)     # bias.fill_(0.01)
    params["linear_out"] = (w_out, b_out)
    return params


if __name__ == "__main__":
    # Small, module-consistent shapes.
    B, L, C_IN = 2, 16, 4
    NUM_CLASS = 3
    KERNEL_SIZES = [3, 5]
    CONV_CHANNELS = [8, 16]
    FACTOR_BLOCK = 2

    key = jax.random.PRNGKey(0)
    key, kx = jax.random.split(key)
    x = jax.random.normal(kx, (B, L, C_IN), jnp.float32)
    seq_lengths = jnp.array([16.0, 10.0], jnp.float32)

    params = init_params(key, C_IN, NUM_CLASS, KERNEL_SIZES, CONV_CHANNELS,
                         FACTOR_BLOCK)

    logits, aux = densenet_forward(params, x, seq_lengths)
    logits = jax.block_until_ready(logits)
    assert logits.shape == (B, NUM_CLASS)
    assert aux is None
    assert bool(jnp.all(jnp.isfinite(logits)))
    print("KERNEL_OK")
</pallas_src>

<mosaic_0001>
module attributes {stable_mosaic.version = 11 : i64} {
  func.func @_fused_kernel(%arg0: i32, %arg1: i32, %arg2: memref<2xf32, #tpu.memory_space<smem>>, %arg3: memref<1x4x128xbf16, #tpu.memory_space<vmem>>, %arg4: memref<1x4x128xbf16, #tpu.memory_space<vmem>>, %arg5: memref<1x4x128xbf16, #tpu.memory_space<vmem>>, %arg6: memref<16x4xbf16, #tpu.memory_space<vmem>>, %arg7: memref<16x1xf32, #tpu.memory_space<vmem>>, %arg8: memref<8x48xbf16, #tpu.memory_space<vmem>>, %arg9: memref<8x1xf32, #tpu.memory_space<vmem>>, %arg10: memref<32x8xbf16, #tpu.memory_space<vmem>>, %arg11: memref<32x1xf32, #tpu.memory_space<vmem>>, %arg12: memref<16x160xbf16, #tpu.memory_space<vmem>>, %arg13: memref<16x1xf32, #tpu.memory_space<vmem>>, %arg14: memref<16x3xf32, #tpu.memory_space<vmem>>, %arg15: memref<1x3xf32, #tpu.memory_space<vmem>>, %arg16: memref<1x1x3xf32, #tpu.memory_space<vmem>>, %arg17: memref<16x1xf32, #tpu.memory_space<vmem>>) attributes {dimension_semantics = [#tpu.dimension_semantics<parallel>, #tpu.dimension_semantics<arbitrary>], iteration_bounds = array<i64: 2, 1>, scalar_prefetch = 1 : i64, scratch_operands = 1 : i64, tpu.core_type = #tpu.core_type<tc>, window_params = [{transform_indices = @transform_0, window_bounds = array<i64: 1, 4, 128>}, {transform_indices = @transform_1, window_bounds = array<i64: 1, 4, 128>}, {transform_indices = @transform_2, window_bounds = array<i64: 1, 4, 128>}, {pipeline_mode = #tpu.pipeline_mode<synchronous>, transform_indices = @transform_3, window_bounds = array<i64: 16, 4>}, {pipeline_mode = #tpu.pipeline_mode<synchronous>, transform_indices = @transform_4, window_bounds = array<i64: 16, 1>}, {pipeline_mode = #tpu.pipeline_mode<synchronous>, transform_indices = @transform_5, window_bounds = array<i64: 8, 48>}, {pipeline_mode = #tpu.pipeline_mode<synchronous>, transform_indices = @transform_6, window_bounds = array<i64: 8, 1>}, {pipeline_mode = #tpu.pipeline_mode<synchronous>, transform_indices = @transform_7, window_bounds = array<i64: 32, 8>}, {pipeline_mode = #tpu.pipeline_mode<synchronous>, transform_indices = @transform_8, window_bounds = array<i64: 32, 1>}, {pipeline_mode = #tpu.pipeline_mode<synchronous>, transform_indices = @transform_9, window_bounds = array<i64: 16, 160>}, {pipeline_mode = #tpu.pipeline_mode<synchronous>, transform_indices = @transform_10, window_bounds = array<i64: 16, 1>}, {pipeline_mode = #tpu.pipeline_mode<synchronous>, transform_indices = @transform_11, window_bounds = array<i64: 16, 3>}, {pipeline_mode = #tpu.pipeline_mode<synchronous>, transform_indices = @transform_12, window_bounds = array<i64: 1, 3>}, {transform_indices = @transform_13, window_bounds = array<i64: 1, 1, 3>}]} {
    %0 = arith.index_cast %arg0 : i32 to index
    %1 = memref.load %arg2[%0] : memref<2xf32, #tpu.memory_space<smem>>
    %c0 = arith.constant 0 : index
    %c0_0 = arith.constant 0 : index
    %c0_1 = arith.constant 0 : index
    %2 = vector.load %arg3[%c0, %c0_0, %c0_1] : memref<1x4x128xbf16, #tpu.memory_space<vmem>>, vector<1x4x128xbf16>
    %3 = vector.shape_cast %2 : vector<1x4x128xbf16> to vector<4x128xbf16>
    %c0_2 = arith.constant 0 : index
    %c0_3 = arith.constant 0 : index
    %c0_4 = arith.constant 0 : index
    %4 = vector.load %arg4[%c0_2, %c0_3, %c0_4] : memref<1x4x128xbf16, #tpu.memory_space<vmem>>, vector<1x4x128xbf16>
    %5 = vector.shape_cast %4 : vector<1x4x128xbf16> to vector<4x128xbf16>
    %c0_5 = arith.constant 0 : index
    %c0_6 = arith.constant 0 : index
    %c0_7 = arith.constant 0 : index
    %6 = vector.load %arg5[%c0_5, %c0_6, %c0_7] : memref<1x4x128xbf16, #tpu.memory_space<vmem>>, vector<1x4x128xbf16>
    %7 = vector.shape_cast %6 : vector<1x4x128xbf16> to vector<4x128xbf16>
    %8 = tpu.concatenate %3, %5, %7 in 1 : vector<4x128xbf16>, vector<4x128xbf16>, vector<4x128xbf16> -> vector<4x384xbf16>
    %9 = tpu.iota {dimensions = array<i32: 1>} : vector<1x384xi32>
    %c128_i32 = arith.constant 128 : i32
    %10 = arith.muli %arg1, %c128_i32 : i32
    %11 = vector.broadcast %10 : i32 to vector<1x384xi32>
    %12 = arith.addi %9, %11 : vector<1x384xi32>
    %c128_i32_8 = arith.constant 128 : i32
    %13 = vector.broadcast %c128_i32_8 : i32 to vector<1x384xi32>
    %14 = arith.subi %12, %13 : vector<1x384xi32>
    %c0_i32 = arith.constant 0 : i32
    %15 = vector.broadcast %c0_i32 : i32 to vector<1x384xi32>
    %16 = arith.cmpi sge, %14, %15 : vector<1x384xi32>
    %c16_i32 = arith.constant 16 : i32
    %17 = vector.broadcast %c16_i32 : i32 to vector<1x384xi32>
    %18 = arith.cmpi slt, %14, %17 : vector<1x384xi32>
    %19 = arith.andi %16, %18 : vector<1x384xi1>
    %20 = arith.extui %19 : vector<1x384xi1> to vector<1x384xi32>
    %21 = arith.sitofp %20 : vector<1x384xi32> to vector<1x384xf32>
    %c0_i32_9 = arith.constant 0 : i32
    %22 = vector.broadcast %c0_i32_9 : i32 to vector<1x384xi32>
    %23 = arith.cmpi sge, %14, %22 : vector<1x384xi32>
    %24 = arith.sitofp %14 : vector<1x384xi32> to vector<1x384xf32>
    %25 = vector.broadcast %1 : f32 to vector<1x384xf32>
    %26 = arith.cmpf olt, %24, %25 : vector<1x384xf32>
    %27 = arith.andi %23, %26 : vector<1x384xi1>
    %28 = arith.extui %27 : vector<1x384xi1> to vector<1x384xi32>
    %29 = arith.sitofp %28 : vector<1x384xi32> to vector<1x384xf32>
    %c0_10 = arith.constant 0 : index
    %c0_11 = arith.constant 0 : index
    %30 = vector.load %arg6[%c0_10, %c0_11] : memref<16x4xbf16, #tpu.memory_space<vmem>>, vector<16x4xbf16>
    %c0_12 = arith.constant 0 : index
    %c0_13 = arith.constant 0 : index
    %31 = vector.load %arg7[%c0_12, %c0_13] : memref<16x1xf32, #tpu.memory_space<vmem>>, vector<16x1xf32>
    %c0_14 = arith.constant 0 : index
    %c0_15 = arith.constant 0 : index
    %32 = vector.load %arg8[%c0_14, %c0_15] : memref<8x48xbf16, #tpu.memory_space<vmem>>, vector<8x48xbf16>
    %c0_16 = arith.constant 0 : index
    %c0_17 = arith.constant 0 : index
    %33 = vector.load %arg9[%c0_16, %c0_17] : memref<8x1xf32, #tpu.memory_space<vmem>>, vector<8x1xf32>
    %cst = arith.constant dense<0.000000e+00> : vector<16x384xf32>
    %34 = tpu.matmul %30, %8, %cst {dimension_numbers = #tpu.dot_dimension_numbers<[1], [0], [0], [1], [0, 0, 1, 1], [], []>} : vector<16x4xbf16>, vector<4x384xbf16>, vector<16x384xf32> -> vector<16x384xf32>
    %35 = vector.broadcast %31 : vector<16x1xf32> to vector<16x384xf32>
    %36 = arith.addf %34, %35 : vector<16x384xf32>
    %cst_18 = arith.constant 0.000000e+00 : f32
    %37 = vector.broadcast %cst_18 : f32 to vector<16x384xf32>
    %38 = arith.maximumf %36, %37 : vector<16x384xf32>
    %39 = vector.broadcast %21 : vector<1x384xf32> to vector<16x384xf32>
    %40 = arith.mulf %38, %39 : vector<16x384xf32>
    %c1_i32 = arith.constant 1 : i32
    %41 = tpu.dynamic_rotate %40 by %c1_i32 dim 1 : vector<16x384xf32>, i32 -> vector<16x384xf32>
    %c383_i32 = arith.constant 383 : i32
    %42 = tpu.dynamic_rotate %40 by %c383_i32 dim 1 : vector<16x384xf32>, i32 -> vector<16x384xf32>
    %43 = tpu.concatenate %41, %40, %42 in 0 : vector<16x384xf32>, vector<16x384xf32>, vector<16x384xf32> -> vector<48x384xf32>
    %44 = arith.truncf %43 : vector<48x384xf32> to vector<48x384xbf16>
    %cst_19 = arith.constant dense<0.000000e+00> : vector<8x384xf32>
    %45 = tpu.matmul %32, %44, %cst_19 {dimension_numbers = #tpu.dot_dimension_numbers<[1], [0], [0], [1], [0, 0, 1, 1], [], []>} : vector<8x48xbf16>, vector<48x384xbf16>, vector<8x384xf32> -> vector<8x384xf32>
    %46 = vector.broadcast %33 : vector<8x1xf32> to vector<8x384xf32>
    %47 = arith.addf %45, %46 : vector<8x384xf32>
    %cst_20 = arith.constant 0.000000e+00 : f32
    %48 = vector.broadcast %cst_20 : f32 to vector<8x384xf32>
    %49 = arith.maximumf %47, %48 : vector<8x384xf32>
    %50 = vector.broadcast %29 : vector<1x384xf32> to vector<8x384xf32>
    %51 = arith.mulf %49, %50 : vector<8x384xf32>
    %52 = arith.truncf %51 : vector<8x384xf32> to vector<8x384xbf16>
    %c0_21 = arith.constant 0 : index
    %c0_22 = arith.constant 0 : index
    %53 = vector.load %arg10[%c0_21, %c0_22] : memref<32x8xbf16, #tpu.memory_space<vmem>>, vector<32x8xbf16>
    %c0_23 = arith.constant 0 : index
    %c0_24 = arith.constant 0 : index
    %54 = vector.load %arg11[%c0_23, %c0_24] : memref<32x1xf32, #tpu.memory_space<vmem>>, vector<32x1xf32>
    %c0_25 = arith.constant 0 : index
    %c0_26 = arith.constant 0 : index
    %55 = vector.load %arg12[%c0_25, %c0_26] : memref<16x160xbf16, #tpu.memory_space<vmem>>, vector<16x160xbf16>
    %c0_27 = arith.constant 0 : index
    %c0_28 = arith.constant 0 : index
    %56 = vector.load %arg13[%c0_27, %c0_28] : memref<16x1xf32, #tpu.memory_space<vmem>>, vector<16x1xf32>
    %cst_29 = arith.constant dense<0.000000e+00> : vector<32x384xf32>
    %57 = tpu.matmul %53, %52, %cst_29 {dimension_numbers = #tpu.dot_dimension_numbers<[1], [0], [0], [1], [0, 0, 1, 1], [], []>} : vector<32x8xbf16>, vector<8x384xbf16>, vector<32x384xf32> -> vector<32x384xf32>
    %58 = vector.broadcast %54 : vector<32x1xf32> to vector<32x384xf32>
    %59 = arith.addf %57, %58 : vector<32x384xf32>
    %cst_30 = arith.constant 0.000000e+00 : f32
    %60 = vector.broadcast %cst_30 : f32 to vector<32x384xf32>
    %61 = arith.maximumf %59, %60 : vector<32x384xf32>
    %62 = vector.broadcast %21 : vector<1x384xf32> to vector<32x384xf32>
    %63 = arith.mulf %61, %62 : vector<32x384xf32>
    %c2_i32 = arith.constant 2 : i32
    %64 = tpu.dynamic_rotate %63 by %c2_i32 dim 1 : vector<32x384xf32>, i32 -> vector<32x384xf32>
    %c1_i32_31 = arith.constant 1 : i32
    %65 = tpu.dynamic_rotate %63 by %c1_i32_31 dim 1 : vector<32x384xf32>, i32 -> vector<32x384xf32>
    %c383_i32_32 = arith.constant 383 : i32
    %66 = tpu.dynamic_rotate %63 by %c383_i32_32 dim 1 : vector<32x384xf32>, i32 -> vector<32x384xf32>
    %c382_i32 = arith.constant 382 : i32
    %67 = tpu.dynamic_rotate %63 by %c382_i32 dim 1 : vector<32x384xf32>, i32 -> vector<32x384xf32>
    %68 = tpu.concatenate %64, %65, %63, %66, %67 in 0 : vector<32x384xf32>, vector<32x384xf32>, vector<32x384xf32>, vector<32x384xf32>, vector<32x384xf32> -> vector<160x384xf32>
    %69 = arith.truncf %68 : vector<160x384xf32> to vector<160x384xbf16>
    %cst_33 = arith.constant dense<0.000000e+00> : vector<16x384xf32>
    %70 = tpu.matmul %55, %69, %cst_33 {dimension_numbers = #tpu.dot_dimension_numbers<[1], [0], [0], [1], [0, 0, 1, 1], [], []>} : vector<16x160xbf16>, vector<160x384xbf16>, vector<16x384xf32> -> vector<16x384xf32>
    %71 = vector.broadcast %56 : vector<16x1xf32> to vector<16x384xf32>
    %72 = arith.addf %70, %71 : vector<16x384xf32>
    %cst_34 = arith.constant 0.000000e+00 : f32
    %73 = vector.broadcast %cst_34 : f32 to vector<16x384xf32>
    %74 = arith.maximumf %72, %73 : vector<16x384xf32>
    %75 = vector.broadcast %29 : vector<1x384xf32> to vector<16x384xf32>
    %76 = arith.mulf %74, %75 : vector<16x384xf32>
    %c0_35 = arith.constant 0 : index
    %c0_36 = arith.constant 0 : index
    %77 = vector.load %arg14[%c0_35, %c0_36] : memref<16x3xf32, #tpu.memory_space<vmem>>, vector<16x3xf32>
    %c0_37 = arith.constant 0 : index
    %c0_38 = arith.constant 0 : index
    %78 = vector.load %arg15[%c0_37, %c0_38] : memref<1x3xf32, #tpu.memory_space<vmem>>, vector<1x3xf32>
    %79 = vector.extract_strided_slice %76 {offsets = [0, 128], sizes = [16, 128], strides = [1, 1]} : vector<16x384xf32> to vector<16x128xf32>
    %c0_i32_39 = arith.constant 0 : i32
    %80 = arith.cmpi eq, %arg1, %c0_i32_39 : i32
    %81 = arith.extui %80 : i1 to i32
    %c0_i32_40 = arith.constant 0 : i32
    %82 = arith.cmpi ne, %81, %c0_i32_40 : i32
    scf.if %82 {
      %cst_48 = arith.constant 0.000000e+00 : f32
      %91 = vector.broadcast %cst_48 : f32 to vector<16x1xf32>
      %c0_49 = arith.constant 0 : index
      %c0_50 = arith.constant 0 : index
      %92 = vector.load %arg17[%c0_49, %c0_50] : memref<16x1xf32, #tpu.memory_space<vmem>>, vector<16x1xf32>
      tpu.vector_store %arg17[%c0_49, %c0_50], %91 {strides = array<i32>} : memref<16x1xf32, #tpu.memory_space<vmem>>, vector<16x1xf32>,
    } else {
    }
    %c0_41 = arith.constant 0 : index
    %c0_42 = arith.constant 0 : index
    %83 = vector.load %arg17[%c0_41, %c0_42] : memref<16x1xf32, #tpu.memory_space<vmem>>, vector<16x1xf32>
    %cst_43 = arith.constant dense<0.000000e+00> : vector<16xf32>
    %84 = vector.multi_reduction <add>, %79, %cst_43 [1] : vector<16x128xf32> to vector<16xf32>
    %85 = vector.shape_cast %84 : vector<16xf32> to vector<16x1xf32>
    %86 = arith.addf %83, %85 : vector<16x1xf32>
    %c0_44 = arith.constant 0 : index
    %c0_45 = arith.constant 0 : index
    %87 = vector.load %arg17[%c0_44, %c0_45] : memref<16x1xf32, #tpu.memory_space<vmem>>, vector<16x1xf32>
    tpu.vector_store %arg17[%c0_44, %c0_45], %86 {strides = array<i32>} : memref<16x1xf32, #tpu.memory_space<vmem>>, vector<16x1xf32>,
    %c0_i32_46 = arith.constant 0 : i32
    %88 = arith.cmpi eq, %arg1, %c0_i32_46 : i32
    %89 = arith.extui %88 : i1 to i32
    %c0_i32_47 = arith.constant 0 : i32
    %90 = arith.cmpi ne, %89, %c0_i32_47 : i32
    scf.if %90 {
      %c0_48 = arith.constant 0 : index
      %c0_49 = arith.constant 0 : index
      %91 = vector.load %arg17[%c0_48, %c0_49] : memref<16x1xf32, #tpu.memory_space<vmem>>, vector<16x1xf32>
      %92 = vector.broadcast %1 : f32 to vector<16x1xf32>
      %93 = arith.divf %91, %92 : vector<16x1xf32>
      %94 = vector.broadcast %93 : vector<16x1xf32> to vector<16x3xf32>
      %95 = arith.mulf %94, %77 : vector<16x3xf32>
      %cst_50 = arith.constant dense<0.000000e+00> : vector<3xf32>
      %96 = vector.multi_reduction <add>, %95, %cst_50 [0] : vector<16x3xf32> to vector<3xf32>
      %97 = vector.shape_cast %96 : vector<3xf32> to vector<1x3xf32>
      %98 = arith.addf %97, %78 : vector<1x3xf32>
      %c0_51 = arith.constant 0 : index
      %c0_52 = arith.constant 0 : index
      %c0_53 = arith.constant 0 : index
      %99 = vector.load %arg16[%c0_51, %c0_52, %c0_53] : memref<1x1x3xf32, #tpu.memory_space<vmem>>, vector<1x1x3xf32>
      %100 = vector.shape_cast %99 : vector<1x1x3xf32> to vector<1x3xf32>
      %101 = vector.shape_cast %98 : vector<1x3xf32> to vector<1x1x3xf32>
      tpu.vector_store %arg16[%c0_51, %c0_52, %c0_53], %101 {strides = array<i32>} : memref<1x1x3xf32, #tpu.memory_space<vmem>>, vector<1x1x3xf32>,
    } else {
    }
    return
  }
  func.func @transform_0(%arg0: i32, %arg1: i32, %arg2: memref<2xf32, #tpu.memory_space<smem>>) -> (i32, i32, i32) {
    %c1_i32 = arith.constant 1 : i32
    %0 = arith.muli %arg1, %c1_i32 : i32
    %c1_i32_0 = arith.constant 1 : i32
    %1 = arith.subi %0, %c1_i32_0 : i32
    %c0_i32 = arith.constant 0 : i32
    %2 = arith.maxsi %1, %c0_i32 : i32
    %c0_i32_1 = arith.constant 0 : i32
    %c0_i32_2 = arith.constant 0 : i32
    return %arg0, %c0_i32_1, %2 : i32, i32, i32
  }
  func.func @transform_1(%arg0: i32, %arg1: i32, %arg2: memref<2xf32, #tpu.memory_space<smem>>) -> (i32, i32, i32) {
    %c0_i32 = arith.constant 0 : i32
    %c0_i32_0 = arith.constant 0 : i32
    return %arg0, %c0_i32, %arg1 : i32, i32, i32
  }
  func.func @transform_2(%arg0: i32, %arg1: i32, %arg2: memref<2xf32, #tpu.memory_space<smem>>) -> (i32, i32, i32) {
    %c1_i32 = arith.constant 1 : i32
    %0 = arith.addi %arg1, %c1_i32 : i32
    %c1_i32_0 = arith.constant 1 : i32
    %1 = arith.muli %0, %c1_i32_0 : i32
    %c0_i32 = arith.constant 0 : i32
    %2 = arith.minsi %1, %c0_i32 : i32
    %c0_i32_1 = arith.constant 0 : i32
    %c0_i32_2 = arith.constant 0 : i32
    return %arg0, %c0_i32_1, %2 : i32, i32, i32
  }
  func.func @transform_3(%arg0: i32, %arg1: i32, %arg2: memref<2xf32, #tpu.memory_space<smem>>) -> (i32, i32) {
    %c0_i32 = arith.constant 0 : i32
    %c0_i32_0 = arith.constant 0 : i32
    %c0_i32_1 = arith.constant 0 : i32
    return %c0_i32, %c0_i32_0 : i32, i32
  }
  func.func @transform_4(%arg0: i32, %arg1: i32, %arg2: memref<2xf32, #tpu.memory_space<smem>>) -> (i32, i32) {
    %c0_i32 = arith.constant 0 : i32
    %c0_i32_0 = arith.constant 0 : i32
    %c0_i32_1 = arith.constant 0 : i32
    return %c0_i32, %c0_i32_0 : i32, i32
  }
  func.func @transform_5(%arg0: i32, %arg1: i32, %arg2: memref<2xf32, #tpu.memory_space<smem>>) -> (i32, i32) {
    %c0_i32 = arith.constant 0 : i32
    %c0_i32_0 = arith.constant 0 : i32
    %c0_i32_1 = arith.constant 0 : i32
    return %c0_i32, %c0_i32_0 : i32, i32
  }
  func.func @transform_6(%arg0: i32, %arg1: i32, %arg2: memref<2xf32, #tpu.memory_space<smem>>) -> (i32, i32) {
    %c0_i32 = arith.constant 0 : i32
    %c0_i32_0 = arith.constant 0 : i32
    %c0_i32_1 = arith.constant 0 : i32
    return %c0_i32, %c0_i32_0 : i32, i32
  }
  func.func @transform_7(%arg0: i32, %arg1: i32, %arg2: memref<2xf32, #tpu.memory_space<smem>>) -> (i32, i32) {
    %c0_i32 = arith.constant 0 : i32
    %c0_i32_0 = arith.constant 0 : i32
    %c0_i32_1 = arith.constant 0 : i32
    return %c0_i32, %c0_i32_0 : i32, i32
  }
  func.func @transform_8(%arg0: i32, %arg1: i32, %arg2: memref<2xf32, #tpu.memory_space<smem>>) -> (i32, i32) {
    %c0_i32 = arith.constant 0 : i32
    %c0_i32_0 = arith.constant 0 : i32
    %c0_i32_1 = arith.constant 0 : i32
    return %c0_i32, %c0_i32_0 : i32, i32
  }
  func.func @transform_9(%arg0: i32, %arg1: i32, %arg2: memref<2xf32, #tpu.memory_space<smem>>) -> (i32, i32) {
    %c0_i32 = arith.constant 0 : i32
    %c0_i32_0 = arith.constant 0 : i32
    %c0_i32_1 = arith.constant 0 : i32
    return %c0_i32, %c0_i32_0 : i32, i32
  }
  func.func @transform_10(%arg0: i32, %arg1: i32, %arg2: memref<2xf32, #tpu.memory_space<smem>>) -> (i32, i32) {
    %c0_i32 = arith.constant 0 : i32
    %c0_i32_0 = arith.constant 0 : i32
    %c0_i32_1 = arith.constant 0 : i32
    return %c0_i32, %c0_i32_0 : i32, i32
  }
  func.func @transform_11(%arg0: i32, %arg1: i32, %arg2: memref<2xf32, #tpu.memory_space<smem>>) -> (i32, i32) {
    %c0_i32 = arith.constant 0 : i32
    %c0_i32_0 = arith.constant 0 : i32
    %c0_i32_1 = arith.constant 0 : i32
    return %c0_i32, %c0_i32_0 : i32, i32
  }
  func.func @transform_12(%arg0: i32, %arg1: i32, %arg2: memref<2xf32, #tpu.memory_space<smem>>) -> (i32, i32) {
    %c0_i32 = arith.constant 0 : i32
    %c0_i32_0 = arith.constant 0 : i32
    %c0_i32_1 = arith.constant 0 : i32
    return %c0_i32, %c0_i32_0 : i32, i32
  }
  func.func @transform_13(%arg0: i32, %arg1: i32, %arg2: memref<2xf32, #tpu.memory_space<smem>>) -> (i32, i32, i32) {
    %c0_i32 = arith.constant 0 : i32
    %c0_i32_0 = arith.constant 0 : i32
    %c0_i32_1 = arith.constant 0 : i32
    return %arg0, %c0_i32, %c0_i32_0 : i32, i32, i32
  }
}

</mosaic_0001>

<bundles_post_ra>
// kernel: tpu_custom_call.1
= control target key start
LH: loop header
LB: loop body
LE: loop exit
PB: predicated region body
PF: predicated region fallthrough
CT: control target
= control target key end

     0   :  { %s2341_s0 = inlined_call_operand.vmem [shape: f32[2], index: 0, kind: input, shape index: {}]   ;;  %s2342_s1 = inlined_call_operand.vmem [shape: bf16[2,4,128], index: 1, kind: input, shape index: {}]   ;;  %s2343_s2 = inlined_call_operand.vmem [shape: bf16[2,4,128], index: 2, kind: input, shape index: {}]   ;;  %s2344_s3 = inlined_call_operand.vmem [shape: bf16[2,4,128], index: 3, kind: input, shape index: {}]   ;;  %s2345_s4 = inlined_call_operand.vmem [shape: bf16[16,4], index: 4, kind: input, shape index: {}]   ;;  %s2346_s5 = inlined_call_operand.vmem [shape: f32[16,1], index: 5, kind: input, shape index: {}]   ;;  %s2347_s6 = inlined_call_operand.vmem [shape: bf16[8,48], index: 6, kind: input, shape index: {}]   ;;  %s2348_s7 = inlined_call_operand.vmem [shape: f32[8,1], index: 7, kind: input, shape index: {}]   ;;  %s2349_s8 = inlined_call_operand.vmem [shape: bf16[32,8], index: 8, kind: input, shape index: {}]   ;;  %s2350_s9 = inlined_call_operand.vmem [shape: f32[32,1], index: 9, kind: input, shape index: {}]   ;;  %s2351_s10 = inlined_call_operand.vmem [shape: bf16[16,160], index: 10, kind: input, shape index: {}]   ;;  %s2352_s11 = inlined_call_operand.vmem [shape: f32[16,1], index: 11, kind: input, shape index: {}]   ;;  %s2353_s12 = inlined_call_operand.vmem [shape: f32[16,3], index: 12, kind: input, shape index: {}]   ;;  %s2354_s13 = inlined_call_operand.vmem [shape: f32[1,3], index: 13, kind: input, shape index: {}]   ;;  %s2355_s14 = inlined_call_operand.hbm [shape: f32[2,1,3], index: 14, kind: output, shape index: {}]  }
   0x1   :  { %s19_s15 = sshll.u32 %s2341_s0, 4  ;;  %s20_s15 = int_to_ptr.vmem [resolvable:$true] %s19_s15 }
   0x2   :  { %s1742_s16 = scalar_lea.vmem %s20_s15, 16  ;;  %p1747_p1 = scmp.lt.s32.totalorder %s20_s15, %s20_s15 }
   0x3   :  { %p1743_p0 = scmp.ne.s32.totalorder %s20_s15, %s1742_s16  ;;  %p1748_p2 = scmp.lt.s32.totalorder %s1742_s16, %s1742_s16 }
   0x5   :  { %p1749_p3 = por %p1748_p2, %p1747_p1 }
   0x7   :  { %p1750_p4 = pnand %p1749_p3, %p1743_p0 }
   0x9   :  { %1753 = shalt.err (!%p1750_p4)  }
   0xa   :  { %s1836_s17 = smov [#allocation4]  }
   0xb   :  { %22 = dma.vmem_to_smem %s20_s15, 16, %s1836_s17, [#allocation3] }
   0xc   :  { %1806 = dma.done.wait [#allocation3], 16 }
   0xd   :  { %1807 = vsyncadd [#allocation3], 4294967280 }
   0xe   :  { %24 = sfence }
   0xf   :  { %25 = vsyncpa [#allocation6], 0 }
  0x10   :  { %27 = vsyncpa [#allocation6 + $0x1], 0  ;;  %s1923_s18 = smov 0   ;;  %s1925_s19 = smov 0  }
  0x11   :  { %s1927_s0 = smov 0   ;;  %s1929_s20 = smov 0  }
  0x12   :  { %s1931_s21 = smov 0   ;;  %s1933_s22 = smov 0  }
  0x13 LB: > { %2360 = sst [smem:[#allocation9_spill]] %s1822_s0  ;;  %s1454_s23 = sadd.s32 4294967295, %s1834_s22   ;;  %s1834_s22 = sphi %s1933_s22, %s33_s22   ;;  %s1830_s21 = sphi %s1931_s21, %s2371_s21   ;;  %s1826_s20 = sphi %s1929_s20, %s2370_s20   ;;  %s1822_s0 = sphi %s1927_s0, %s2369_s0   ;;  %s1818_s19 = sphi %s1925_s19, %s2373_s19   ;;  %s1814_s18 = sphi %s1923_s18, %s2372_s18  }
  0x14   : > { %2361 = sst [smem:[#allocation10_spill]] %s1830_s21  ;;  %s1455_s24 = sadd.s32 4294967294, %s1834_s22  }
  0x15   : > { %s45_s25 = sadd.s32 1, %s1830_s21  ;;  %s358_s26 = sadd.s32 1, %s1822_s0 }
  0x16   : > { %p47_p5 = scmp.ge.s32.totalorder %s45_s25, 2  ;;  %p368_p6 = scmp.ne.s32.totalorder %s1822_s0, %s1818_s19 }
  0x17   : > { %p369_p7 = scmp.eq.s32.totalorder %s1454_s23, 1  ;;  %p374_p8 = scmp.ne.s32.totalorder %s1818_s19, %s1814_s18 }
  0x18   : > { %s2375_s25 = smov (%p47_p5, %s45_s25), 0  ;;  %p375_p10 = scmp.eq.s32.totalorder %s1455_s24, 1 }
  0x19   : > { %2362 = sst [smem:[#allocation11_spill]] %s2375_s25  ;;  %p1963_p9 = por %p369_p7, %p368_p6 }
  0x1a   : > { %s355_s28 = ssub.s32 %s1830_s21, %s2375_s25  ;;  %p1458_p11 = scmp.ge.s32.totalorder %s1834_s22, 1 }
  0x1b   : > { %p356_p12 = scmp.eq.s32.totalorder %s355_s28, 0  ;;  %p1970_p13 = por %p375_p10, %p374_p8 }
  0x1c   : > { %p465_p0 = scmp.lt.s32.totalorder %s1834_s22, 3 }
  0x1d   : > { %s2364_s29 = scalar_select %p1970_p13, 1, 0 }
  0x1e   : > { %s1976_s30 = scalar_select %p356_p12, %s1822_s0, %s358_s26  }
  0x1f   : > { %2365 = sst [smem:[#allocation12_spill]] %s2364_s29  ;;  %p466_p1 = pnand %p1458_p11, %p465_p0 }
  0x20   : > { %2366 = sst [smem:[#allocation13_spill]] %s1976_s30  ;;  %p533_p2 = scmp.lt.s32.totalorder (!%p466_p1), %s1826_s20, 1  ;;  %v1837_v0 = vmov (!%p466_p1), 0   ;;  %v613_v1 = vld [vmem:[%s2346_s5] sm:$0xff] (!%p466_p1)  ;;  %v614_v2 = vld [vmem:[%s2346_s5 + $0x8] sm:$0xff] (!%p466_p1)  ;;  %vm636_vm0 = vcmask (!%p466_p1), 1041408   ;;  %v568_v10 = vlaneseq (!%p466_p1) }
  0x21   : > { %469 = sbr.rel (%p466_p1) target bundleno = 1567 (0x61f), region = 72  ;;  %678 = vmatprep.mubr.bf16.mxu1 (!%p466_p1), %v1837_v0  ;;  %1582 = vset.pattern.permute.xlu0 (!%p466_p1), %v1837_v0  ;;  %v1734_v6 = vld [vmem:[%s2345_s4] sm:$0xff] (!%p466_p1)   ;;  %vm632_vm1 = vcmask (!%p466_p1), 31744   ;;  %v1838_v8 = vmov (!%p466_p1), 0.0   ;;  %vm1839_vm2 = vmmov (!%p466_p1), 0   ;;  %s1840_s0 = smov (!%p466_p1), 1  }
  0x22   : > { %619 = vperm.xlu0 (!%p466_p1), %1582, %v613_v1   ;;  %979 = vmatprep.mubr.bf16.mxu0 (!%p466_p1), %v1837_v0  ;;  %v2006_v11 = vand.u32 (!%p466_p1), 127, %v568_v10  ;;  %v616_v49 = vld [vmem:[%s2348_s7] sm:$0xff] (!%p466_p1)  ;;  %v893_v50 = vld [vmem:[%s2350_s9 + $0x8] sm:$0xff] (!%p466_p1)  ;;  %v895_v51 = vld [vmem:[%s2350_s9 + $0x18] sm:$0xff] (!%p466_p1)  ;;  %vm794_vm6 = vcmask (!%p466_p1), 392192   ;;  %vm930_vm7 = vcmask (!%p466_p1), 64512  }
  0x23   : > { %1613 = vset.pattern.permute.xlu1 (!%p466_p1), %v1837_v0  ;;  %s564_s28 = sld [smem:[#allocation4 + %s1826_s20]] (!%p466_p1)  ;;  %vm937_vm9 = vcmask (!%p466_p1), 1043456   ;;  %s1843_s24 = smov (!%p466_p1), 126   ;;  %vm1242_vm11 = vcmask (!%p466_p1), 261120   ;;  %vm1298_vm14 = vcmask (!%p466_p1), 7168   ;;  %vm1332_vm15 = vcmask (!%p466_p1), 23552  }
  0x24   : > { %v570_v13 = vadd.s32 (!%p466_p1), 128, %v2006_v11  ;;  %vm754_vm4 = vcmp.lt.s32.totalorder (!%p466_p1), %v2006_v11, 1  ;;  %vm773_vm5 = vcmp.lt.s32.totalorder (!%p466_p1), %v2006_v11, 127  ;;  %vm1097_vm12 = vcmp.lt.s32.totalorder (!%p466_p1), %v2006_v11, 2  ;;  %1299 = vst.msk [vmem:[#allocation2] sm:$0xff] (!%p466_p1), %vm1298_vm14, %v1838_v8  ;;  %1300 = vst.msk [vmem:[#allocation2 + $0x8] sm:$0xff] (!%p466_p1), %vm1298_vm14, %v1838_v8 }
  0x25   : > { %vm1194_vm13 = vcmp.lt.s32.totalorder (!%p466_p1), %v2006_v11, 126  ;;  %s1484_s29 = sshll.u32 (!%p466_p1), %s1826_s20, 4 }
  0x26   : > { %624 = vperm.xlu0 (!%p466_p1), %1582, %v614_v2   ;;  %v2009_v14 = vadd.s32 (!%p466_p1), 4294967168, %v570_v13 }
  0x28   : > { %s534_s17 = scalar_select %p533_p2, %s1826_s20, 1  ;;  %vm584_vm3 = vcmp.lt.s32.totalorder %v2009_v14, 16 }
  0x29   : > { %v2013_v26 = vsel %vm584_vm3, 1.0, %v1838_v8  ;;  %s1844_s20 = smov [#allocation5]  }
  0x2a   : > { %s1459_s26 = sshll.u32 %s534_s17, 1  ;;  %s528_s17 = sand.u32 1, %s1818_s19  }
  0x2b   : > { %s549_s21 = scalar_lea.vmem %s2343_s2, %s1459_s26  ;;  %s539_s15 = scalar_lea.vmem %s2342_s1, %s1459_s26 }
  0x2c   : > { %v566_v3 = vld [vmem:[%s549_s21] sm:$0x3]  ;;  %s559_s23 = scalar_lea.vmem %s2344_s3, %s1459_s26  ;;  %s1841_s21 = smov 127  }
  0x2d   : > { %v565_v4 = vld [vmem:[%s539_s15] sm:$0x3]  ;;  %1469 = vmatprep.subr.msk.bf16.mxu1 %vm636_vm0, %v566_v3  ;;  %s529_s30 = scalar_lea.vmem [#allocation5], %s528_s17  ;;  %s2294_s15 = scalar_lea.hbm %s2355_s14, %s1484_s29 }
  0x2e   : > { %v638_v5 = vsel %vm636_vm0, %v565_v4, 0  ;;  %v567_v7 = vld [vmem:[%s559_s23] sm:$0x3]  ;;  %s1842_s23 = smov 2   ;;  %s1346_s16 = scalar_lea.sflag [#allocation6], %s528_s17 }
  0x2f   : > { %647 = vmatpush1.bf16.msra.mxu1 %v638_v5  ;;  %v644_v9 = vsel %vm636_vm0, %v567_v7, 0  ;;  %vm1343_vm0 = vcmask 16384  }
  0x30   : > { %1496 = vmatprep.subr.bf16.mxu1 %v1838_v8 }
  0x32   : > { %1470 = vmatmul.mubr.msk.bf16.vlgmr.msra.gmra.mrb[0].mxu1 %vm632_vm1, %v1734_v6 }
  0x33   : > { %1497 = vmatpush3.bf16.msra.mxu1 %v644_v9  ;;  %1498 = vmatprep.mubr.msk.bf16.mxu1 %vm1839_vm2, %v1838_v8 }
  0x3a   : > { %1499 = vmatmul.mubr.msk.bf16.vlgmr.msra.gmra.mrb[4].mxu1 %vm632_vm1, %v1734_v6 }
  0x3b   : > { %830 = vmatprep.mubr.bf16.mxu1 %v1837_v0 }
  0xa1   : > { %v620_v12 = vpop.permute.xlu0 %619 }
  0xa5   : > { %v625_v16 = vpop.permute.xlu0 %624 }
 0x105   : > { %v680_v15 = vpop.f32.mrb[0].mxu1 }
 0x106   : > { %v681_v17 = vadd.f32 %v680_v15, %v620_v12  ;;  %v682_v18 = vpop.f32.mrb[1].mxu1 }
 0x107   : > { %v683_v19 = vadd.f32 %v682_v18, %v620_v12  ;;  %v684_v20 = vpop.f32.mrb[2].mxu1 }
 0x108   : > { %v730_v21 = vmax.f32 %v681_v17, 0.0  ;;  %v685_v22 = vadd.f32 %v684_v20, %v625_v16  ;;  %v686_v23 = vpop.f32.mrb[3].mxu1 }
 0x109   : > { %v731_v24 = vmax.f32 %v683_v19, 0.0  ;;  %v687_v25 = vadd.f32 %v686_v23, %v625_v16 }
 0x10a   : > { %v733_v27 = vmax.f32 %v685_v22, 0.0  ;;  %v2015_v29 = vmul.f32 0.0, %v730_v21 }
 0x10b   : > { %v734_v28 = vmax.f32 %v687_v25, 0.0  ;;  %v737_v31 = vmul.f32 %v2013_v26, %v731_v24  ;;  %v615_v24 = vld [vmem:[%s2347_s6] sm:$0xf] }
 0x10c   : > { %v2017_v30 = vmul.f32 0.0, %v733_v27 }
 0x10d   : > { %v740_v32 = vmul.f32 %v2013_v26, %v734_v28  ;;  %v723_v33 = vpop.f32.mrb[4].mxu1 }
 0x10e   : > { %v783_v34 = vpack.c.bf16 %v2017_v30, %v2015_v29  ;;  %v724_v35 = vadd.f32 %v723_v33, %v620_v12  ;;  %v1500_v36 = vpop.f32.mrb[5].mxu1  ;;  %v1583_v37 = vpack.i.bf16 %v2017_v30, %v2015_v29  ;;  %v1735_v30 = vld [vmem:[%s2349_s8] sm:$0xff]   ;;  %v596_v33 = vcvt.s32.f32 %v2009_v14 }
 0x10f   : > { %v726_v38 = vpop.f32.mrb[6].mxu1  ;;  %v1588_v39 = vpack.i.bf16 %v740_v32, %v737_v31  ;;  %v784_v40 = vpack.c.bf16 %v740_v32, %v737_v31  ;;  %v892_v31 = vld [vmem:[%s2350_s9] sm:$0xff]  ;;  %v894_v32 = vld [vmem:[%s2350_s9 + $0x10] sm:$0xff] }
 0x110   : > { %v732_v41 = vmax.f32 %v724_v35, 0.0  ;;  %v727_v42 = vadd.f32 %v726_v38, %v625_v16  ;;  %v1501_v43 = vpop.f32.mrb[7].mxu1  ;;  %1584 = vrot.lane.b32.xlu1 %v1583_v37, %s1840_s0  ;;  %v571_v35 = vadd.s32 256, %v2006_v11 }
 0x112   : > { %v735_v44 = vmax.f32 %v727_v42, 0.0  ;;  %v2026_v45 = vmul.f32 0.0, %v732_v41 }
 0x114   : > { %v2028_v46 = vmul.f32 0.0, %v735_v44  ;;  %1589 = vrot.lane.b32.xlu1 %v1588_v39, %s1840_s0 }
 0x116   : > { %v785_v47 = vpack.c.bf16 %v2028_v46, %v2026_v45  ;;  %v1593_v48 = vpack.i.bf16 %v2028_v46, %v2026_v45  ;;  %v1464_v45 = vadd.s32 4294967168, %v571_v35 }
 0x118   : > { %1594 = vrot.lane.b32.xlu0 %v1593_v48, %s1840_s0  ;;  %1599 = vrot.lane.b32.xlu1 %v1588_v39, %s1841_s21 }
 0x11c   : > { %1604 = vrot.lane.b32.xlu0 %v1593_v48, %s1841_s21  ;;  %1609 = vrot.lane.b32.xlu1 %v1583_v37, %s1841_s21 }
 0x120   : > { %791 = vperm.xlu0 %1582, %v616_v49   ;;  %902 = vperm.xlu1 %1613, %v892_v31   ;;  %v597_v49 = vcvt.s32.f32 %v1464_v45 }
 0x124   : > { %907 = vperm.xlu0 %1582, %v893_v50   ;;  %912 = vperm.xlu1 %1613, %v894_v32  }
 0x128   : > { %917 = vperm.xlu0 %1582, %v895_v51  }
 0x182   : > { %v1585_v52 = vpop.permute.xlu1 %1584 }
 0x183   : > { %v1587_v54 = vunpack.i.h.bf16 %v1585_v52  ;;  %v1586_v55 = vunpack.i.l.bf16 %v1585_v52 }
 0x186   : > { %v1590_v53 = vpop.permute.xlu1 %1589 }
 0x187   : > { %v1592_v56 = vunpack.i.h.bf16 %v1590_v53  ;;  %v1591_v57 = vunpack.i.l.bf16 %v1590_v53 }
 0x189   : > { %v757_v58 = vsel %vm754_vm4, %v1586_v55, %v1591_v57  ;;  %v758_v59 = vsel %vm754_vm4, %v1587_v54, %v1592_v56 }
 0x18a   : > { %v1595_v60 = vpop.permute.xlu0 %1594  ;;  %v1600_v61 = vpop.permute.xlu1 %1599  ;;  %v781_v62 = vpack.c.bf16 %v758_v59, %v757_v58 }
 0x18b   : > { %v1597_v63 = vunpack.i.h.bf16 %v1595_v60  ;;  %v1596_v1 = vunpack.i.l.bf16 %v1595_v60  ;;  %v1602_v13 = vunpack.i.h.bf16 %v1600_v61  ;;  %v1601_v15 = vunpack.i.l.bf16 %v1600_v61  ;;  %v1736_v60 = vld [vmem:[%s2349_s8 + $0x8] sm:$0xff]  }
 0x18c   : > { %798 = vmatprep.subr.bf16.mxu1 %v781_v62 }
 0x18d   : > { %v759_v2 = vsel %vm754_vm4, %v1596_v1, %v1586_v55  ;;  %v760_v3 = vsel %vm754_vm4, %v1597_v63, %v1587_v54  ;;  %v755_v22 = vsel %vm754_vm4, %v1591_v57, %v1596_v1  ;;  %v756_v23 = vsel %vm754_vm4, %v1592_v56, %v1597_v63 }
 0x18e   : > { %v780_v4 = vpack.c.bf16 %v760_v3, %v759_v2  ;;  %v1605_v5 = vpop.permute.xlu0 %1604  ;;  %v1610_v6 = vpop.permute.xlu1 %1609  ;;  %v782_v25 = vpack.c.bf16 %v756_v23, %v755_v22 }
 0x18f   : > { %v1607_v7 = vunpack.i.h.bf16 %v1605_v5  ;;  %v1606_v9 = vunpack.i.l.bf16 %v1605_v5  ;;  %v1612_v10 = vunpack.i.h.bf16 %v1610_v6  ;;  %v1611_v12 = vunpack.i.l.bf16 %v1610_v6 }
 0x190   : > { %799 = vmatpush1.bf16.msra.mxu1 %v780_v4 }
 0x191   : > { %800 = vmatprep.subr.bf16.mxu1 %v784_v40  ;;  %v774_v16 = vsel %vm773_vm5, %v1601_v15, %v1606_v9  ;;  %v775_v17 = vsel %vm773_vm5, %v1602_v13, %v1607_v7  ;;  %v776_v18 = vsel %vm773_vm5, %v1611_v12, %v1601_v15  ;;  %v777_v19 = vsel %vm773_vm5, %v1612_v10, %v1602_v13 }
 0x192   : > { %v787_v20 = vpack.c.bf16 %v775_v17, %v774_v16  ;;  %v786_v21 = vpack.c.bf16 %v777_v19, %v776_v18  ;;  %v779_v27 = vsel %vm773_vm5, %v1607_v7, %v1612_v10  ;;  %v778_v28 = vsel %vm773_vm5, %v1606_v9, %v1611_v12 }
 0x193   : > { %v788_v29 = vpack.c.bf16 %v779_v27, %v778_v28 }
 0x194   : > { %801 = vmatpush1.bf16.msra.mxu1 %v783_v34  ;;  %v2100_v34 = vstv %s564_s28 }
 0x195   : > { %802 = vmatprep.subr.bf16.mxu1 %v787_v20  ;;  %vm600_vm8 = vcmp.lt.f32.partialorder %v596_v33, %v2100_v34  ;;  %vm601_vm10 = vcmp.lt.f32.partialorder %v597_v49, %v2100_v34  ;;  %1740 = vrcp.f32 %v2100_v34  ;;  %v1291_v34 = vld [vmem:[%s2353_s12] sm:$0xff] }
 0x196   : > { %v2105_v44 = vsel %vm600_vm8, 1.0, %v1838_v8  ;;  %v1467_v55 = vsel %vm601_vm10, 1.0, %v1838_v8 }
 0x198   : > { %803 = vmatpush1.bf16.msra.mxu1 %v786_v21 }
 0x199   : > { %1502 = vmatprep.subr.bf16.mxu1 %v1838_v8 }
 0x19b   : > { %1472 = vmatmul.mubr.msk.bf16.vlgmr.msra.gmra.mrb[8].mxu1 %vm794_vm6, %v615_v24 }
 0x19c   : > { %1503 = vmatpush3.bf16.msra.mxu1 %v782_v25  ;;  %1508 = vmatprep.mubr.msk.bf16.mxu1 %vm1839_vm2, %v1838_v8 }
 0x19d   : > { %1504 = vmatprep.subr.bf16.mxu1 %v1838_v8 }
 0x19f   : > { %v792_v36 = vpop.permute.xlu0 %791  ;;  %v903_v63 = vpop.permute.xlu1 %902 }
 0x1a0   : > { %1505 = vmatpush3.bf16.msra.mxu1 %v785_v47 }
 0x1a1   : > { %1506 = vmatprep.subr.bf16.mxu1 %v1838_v8 }
 0x1a3   : > { %v913_v16 = vpop.permute.xlu1 %912 }
 0x1a4   : > { %1507 = vmatpush3.bf16.msra.mxu1 %v788_v29 }
 0x1a7   : > { %1509 = vmatmul.mubr.msk.bf16.vlgmr.msra.gmra.mrb[12].mxu1 %vm794_vm6, %v615_v24 }
 0x1a8   : > { %1514 = vmatprep.mubr.msk.bf16.mxu1 %vm930_vm7, %v1735_v30 }
 0x26e   : > { %v832_v37 = vpop.f32.mrb[8].mxu1 }
 0x26f   : > { %v833_v38 = vadd.f32 %v832_v37, %v792_v36  ;;  %v834_v39 = vpop.f32.mrb[9].mxu1 }
 0x270   : > { %v835_v40 = vadd.f32 %v834_v39, %v792_v36  ;;  %v836_v41 = vpop.f32.mrb[10].mxu1 }
 0x271   : > { %v879_v42 = vmax.f32 %v833_v38, 0.0  ;;  %v837_v43 = vpop.f32.mrb[11].mxu1 }
 0x272   : > { %v880_v46 = vmax.f32 %v835_v40, 0.0 }
 0x273   : > { %v882_v14 = vmul.f32 0.0, %v879_v42 }
 0x274   : > { %v883_v47 = vmul.f32 %v2105_v44, %v880_v46 }
 0x275   : > { %v885_v48 = vpack.c.bf16 %v882_v14, %v882_v14 }
 0x276   : > { %v886_v50 = vpack.c.bf16 %v883_v47, %v883_v47 }
 0x277   : > { %v939_v51 = vsel %vm937_vm9, %v885_v48, 0 }
 0x278   : > { %1476 = vmatprep.subr.msk.bf16.mxu0 %vm937_vm9, %v886_v50 }
 0x279   : > { %948 = vmatpush1.bf16.msra.mxu0 %v939_v51 }
 0x27a   : > { %v873_v52 = vpop.f32.mrb[12].mxu1 }
 0x27b   : > { %v874_v53 = vadd.f32 %v873_v52, %v792_v36  ;;  %v1510_v54 = vpop.f32.mrb[13].mxu1 }
 0x27c   : > { %v876_v56 = vpop.f32.mrb[14].mxu1  ;;  %1477 = vmatmul.mubr.msk.bf16.vlgmr.msra.gmra.mrb[0].mxu0 %vm930_vm7, %v1735_v30 }
 0x27d   : > { %v881_v57 = vmax.f32 %v874_v53, 0.0  ;;  %v1511_v58 = vpop.f32.mrb[15].mxu1  ;;  %989 = vmatprep.mubr.bf16.mxu0 %v1837_v0  ;;  %v908_v0 = vpop.permute.xlu0 %907 }
 0x27f   : > { %v884_v59 = vmul.f32 %v1467_v55, %v881_v57 }
 0x281   : > { %v887_v61 = vpack.c.bf16 %v884_v59, %v884_v59  ;;  %v918_v25 = vpop.permute.xlu0 %917 }
 0x283   : > { %1518 = vmatprep.subr.msk.bf16.mxu1 %vm937_vm9, %v887_v61  ;;  %v945_v62 = vsel %vm937_vm9, %v887_v61, 0 }
 0x284   : > { %1478 = vmatmul.mubr.msk.bf16.gmra.mrb[4].mxu0 %vm930_vm7, %v1736_v60  ;;  %1513 = vmatpush3.bf16.msra.mxu1 %v945_v62 }
 0x287   : > { %1515 = vmatmul.mubr.msk.bf16.vlgmr.msra.gmra.mrb[16].mxu1 %vm930_vm7, %v1736_v60 }
 0x34f   : > { %v981_v1 = vpop.f32.mrb[0].mxu0 }
 0x350   : > { %v983_v2 = vpop.f32.mrb[1].mxu0  ;;  %v982_v3 = vadd.f32 %v981_v1, %v903_v63 }
 0x351   : > { %v984_v4 = vadd.f32 %v983_v2, %v903_v63  ;;  %v985_v5 = vpop.f32.mrb[2].mxu0  ;;  %v1739_v2 = vld [vmem:[%s2351_s10 + $0x4] ss:$8 sps:$4 sm:$0xff]  }
 0x352   : > { %v1049_v6 = vmax.f32 %v982_v3, 0.0  ;;  %v986_v7 = vadd.f32 %v985_v5, %v908_v0  ;;  %v987_v9 = vpop.f32.mrb[3].mxu0  ;;  %1483 = vmatprep.mubr.msk.bf16.mxu0 %vm1242_vm11, %v1739_v2  ;;  %v899_v3 = vld [vmem:[%s2352_s11 + $0x8] sm:$0xff] }
 0x353   : > { %v1050_v10 = vmax.f32 %v984_v4, 0.0  ;;  %v988_v12 = vadd.f32 %v987_v9, %v908_v0 }
 0x354   : > { %v1052_v13 = vmax.f32 %v986_v7, 0.0  ;;  %v2121_v17 = vmul.f32 0.0, %v1049_v6 }
 0x355   : > { %v1053_v15 = vmax.f32 %v988_v12, 0.0  ;;  %v2126_v19 = vmul.f32 %v2013_v26, %v1050_v10 }
 0x356   : > { %v2123_v18 = vmul.f32 0.0, %v1052_v13 }
 0x357   : > { %v2129_v20 = vmul.f32 %v2013_v26, %v1053_v15  ;;  %v991_v21 = vpop.f32.mrb[4].mxu0 }
 0x358   : > { %v993_v22 = vpop.f32.mrb[5].mxu0  ;;  %v992_v23 = vadd.f32 %v991_v21, %v913_v16  ;;  %v2133_v24 = vpack.i.bf16 %v2123_v18, %v2121_v17  ;;  %v1211_v43 = vpack.c.bf16 %v2123_v18, %v2121_v17 }
 0x359   : > { %v994_v27 = vadd.f32 %v993_v22, %v913_v16  ;;  %v995_v28 = vpop.f32.mrb[6].mxu0  ;;  %v1619_v29 = vpack.i.bf16 %v2129_v20, %v2126_v19  ;;  %v1212_v39 = vpack.c.bf16 %v2129_v20, %v2126_v19 }
 0x35a   : > { %v1055_v30 = vmax.f32 %v992_v23, 0.0  ;;  %v996_v31 = vadd.f32 %v995_v28, %v918_v25  ;;  %v997_v32 = vpop.f32.mrb[7].mxu0  ;;  %v1516_v33 = vpop.f32.mrb[16].mxu1  ;;  %1615 = vrot.lane.b32.xlu1 %v2133_v24, %s1842_s23 }
 0x35b   : > { %v1056_v35 = vmax.f32 %v994_v27, 0.0  ;;  %v998_v36 = vadd.f32 %v997_v32, %v918_v25  ;;  %v1043_v37 = vadd.f32 %v1516_v33, %v913_v16  ;;  %v1034_v38 = vpop.f32.mrb[17].mxu1  ;;  %1620 = vrot.lane.b32.xlu0 %v1619_v29, %s1842_s23 }
 0x35c   : > { %v1058_v40 = vmax.f32 %v996_v31, 0.0  ;;  %v1035_v41 = vadd.f32 %v1034_v38, %v903_v63  ;;  %v1517_v42 = vpop.f32.mrb[18].mxu1  ;;  %v2144_v48 = vmul.f32 0.0, %v1055_v30 }
 0x35d   : > { %v1059_v45 = vmax.f32 %v998_v36, 0.0  ;;  %v1057_v46 = vmax.f32 %v1043_v37, 0.0  ;;  %v1046_v14 = vadd.f32 %v1517_v42, %v918_v25  ;;  %v1037_v47 = vpop.f32.mrb[19].mxu1  ;;  %v2149_v52 = vmul.f32 %v2013_v26, %v1056_v35 }
 0x35e   : > { %v2146_v49 = vmul.f32 0.0, %v1058_v40  ;;  %v1051_v50 = vmax.f32 %v1035_v41, 0.0  ;;  %v1038_v51 = vadd.f32 %v1037_v47, %v908_v0  ;;  %v898_v0 = vld [vmem:[%s2352_s11] sm:$0xff] }
 0x35f   : > { %v2152_v53 = vmul.f32 %v2013_v26, %v1059_v45  ;;  %v1069_v54 = vmul.f32 0.0, %v1057_v46  ;;  %v1060_v55 = vmax.f32 %v1046_v14, 0.0 }
 0x360   : > { %v1063_v56 = vmul.f32 0.0, %v1051_v50  ;;  %v1054_v57 = vmax.f32 %v1038_v51, 0.0  ;;  %v1624_v58 = vpack.i.bf16 %v2146_v49, %v2144_v48  ;;  %v1213_v1 = vpack.c.bf16 %v2146_v49, %v2144_v48 }
 0x361   : > { %v1072_v59 = vmul.f32 0.0, %v1060_v55  ;;  %v1629_v60 = vpack.i.bf16 %v2152_v53, %v2149_v52  ;;  %v1214_v26 = vpack.c.bf16 %v2152_v53, %v2149_v52 }
 0x362   : > { %v1066_v61 = vmul.f32 0.0, %v1054_v57  ;;  %1625 = vrot.lane.b32.xlu0 %v1624_v58, %s1842_s23 }
 0x363   : > { %1630 = vrot.lane.b32.xlu1 %v1629_v60, %s1842_s23  ;;  %v1634_v62 = vpack.i.bf16 %v1072_v59, %v1069_v54 }
 0x364   : > { %v1639_v63 = vpack.i.bf16 %v1066_v61, %v1063_v56 }
 0x366   : > { %1635 = vrot.lane.b32.xlu0 %v1634_v62, %s1842_s23 }
 0x367   : > { %1640 = vrot.lane.b32.xlu1 %v1639_v63, %s1842_s23 }
 0x36a   : > { %1650 = vrot.lane.b32.xlu0 %v1619_v29, %s1840_s0 }
 0x36b   : > { %1645 = vrot.lane.b32.xlu1 %v2133_v24, %s1840_s0 }
 0x36e   : > { %1655 = vrot.lane.b32.xlu0 %v1624_v58, %s1840_s0 }
 0x36f   : > { %1660 = vrot.lane.b32.xlu1 %v1639_v63, %s1840_s0 }
 0x372   : > { %1670 = vrot.lane.b32.xlu0 %v1634_v62, %s1840_s0 }
 0x373   : > { %1665 = vrot.lane.b32.xlu1 %v1629_v60, %s1840_s0 }
 0x376   : > { %1685 = vrot.lane.b32.xlu0 %v1629_v60, %s1841_s21 }
 0x377   : > { %1675 = vrot.lane.b32.xlu1 %v1619_v29, %s1841_s21 }
 0x37a   : > { %1695 = vrot.lane.b32.xlu0 %v1639_v63, %s1841_s21 }
 0x37b   : > { %1680 = vrot.lane.b32.xlu1 %v2133_v24, %s1841_s21 }
 0x37e   : > { %1700 = vrot.lane.b32.xlu0 %v1624_v58, %s1841_s21 }
 0x37f   : > { %1690 = vrot.lane.b32.xlu1 %v1634_v62, %s1841_s21  ;;  %s1358_s21 = sshll.u32 %s529_s30, 4  ;;  %s2296_s21 = int_to_ptr.vmem [resolvable:$true] %s1358_s21 }
 0x380   : > { %s1754_s23 = scalar_lea.vmem %s2296_s21, 16 }
 0x381   : > { %p1755_p3 = scmp.ne.s32.totalorder %s2296_s21, %s1754_s23 }
 0x382   : > { %1715 = vrot.lane.b32.xlu0 %v1639_v63, %s1843_s24 }
 0x383   : > { %1705 = vrot.lane.b32.xlu1 %v1619_v29, %s1843_s24  ;;  %p1756_p4 = pnand %p1755_p3, %p1963_p9 }
 0x385   : > { %p1757_p5 = pneg %p1756_p4 }
 0x386   : > { %1720 = vrot.lane.b32.xlu0 %v1629_v60, %s1843_s24 }
 0x387   : > { %1710 = vrot.lane.b32.xlu1 %v2133_v24, %s1843_s24 }
 0x38a   : > { %1730 = vrot.lane.b32.xlu0 %v1624_v58, %s1843_s24 }
 0x38b   : > { %1725 = vrot.lane.b32.xlu1 %v1634_v62, %s1843_s24  ;;  %s1758_s24 = sshll.u32 %s1844_s20, 4  ;;  %s1759_s24 = int_to_ptr.vmem [resolvable:$false] %s1758_s24 }
 0x38c   : > { %s1760_s25 = scalar_lea.vmem %s1759_s24, 32  ;;  %p1761_p6 = scmp.lt.s32.totalorder %s2296_s21, %s1759_s24 }
 0x38d   : > { %p1762_p7 = scmp.lt.s32.totalorder %s1760_s25, %s1754_s23 }
 0x38e   : > { %1230 = vperm.xlu0 %1582, %v899_v3  }
 0x38f   : > { %1225 = vperm.xlu1 %1613, %v898_v0   ;;  %p1763_p8 = por %p1762_p7, %p1761_p6 }
 0x391   : > { %p1764_p10 = pnand %p1763_p8, %p1757_p5 }
 0x3cc   : > { %v1616_v4 = vpop.permute.xlu1 %1615 }
 0x3cd   : > { %v1618_v5 = vunpack.i.h.bf16 %v1616_v4  ;;  %v1617_v6 = vunpack.i.l.bf16 %v1616_v4  ;;  %v1621_v7 = vpop.permute.xlu0 %1620 }
 0x3ce   : > { %v1623_v9 = vunpack.i.h.bf16 %v1621_v7  ;;  %v1622_v10 = vunpack.i.l.bf16 %v1621_v7 }
 0x3d0   : > { %v1098_v12 = vsel %vm1097_vm12, %v1617_v6, %v1622_v10  ;;  %v1099_v13 = vsel %vm1097_vm12, %v1618_v5, %v1623_v9 }
 0x3d1   : > { %v1204_v15 = vpack.c.bf16 %v1099_v13, %v1098_v12 }
 0x3d3   : > { %1246 = vmatprep.subr.bf16.mxu0 %v1204_v15 }
 0x3d4   : > { %v1626_v16 = vpop.permute.xlu0 %1625 }
 0x3d5   : > { %v1628_v21 = vunpack.i.h.bf16 %v1626_v16  ;;  %v1627_v22 = vunpack.i.l.bf16 %v1626_v16  ;;  %v1631_v23 = vpop.permute.xlu1 %1630 }
 0x3d6   : > { %v1633_v24 = vunpack.i.h.bf16 %v1631_v23  ;;  %v1632_v25 = vunpack.i.l.bf16 %v1631_v23 }
 0x3d8   : > { %v1636_v27 = vpop.permute.xlu0 %1635  ;;  %v1100_v29 = vsel %vm1097_vm12, %v1627_v22, %v1632_v25  ;;  %v1101_v30 = vsel %vm1097_vm12, %v1628_v21, %v1633_v24 }
 0x3d9   : > { %v1641_v28 = vpop.permute.xlu1 %1640  ;;  %v1638_v31 = vunpack.i.h.bf16 %v1636_v27  ;;  %v1637_v32 = vunpack.i.l.bf16 %v1636_v27  ;;  %v1206_v46 = vpack.c.bf16 %v1101_v30, %v1100_v29 }
 0x3da   : > { %v1643_v33 = vunpack.i.h.bf16 %v1641_v28  ;;  %v1642_v35 = vunpack.i.l.bf16 %v1641_v28 }
 0x3db   : > { %v1104_v14 = vsel %vm1097_vm12, %v1637_v32, %v1627_v22  ;;  %v1105_v47 = vsel %vm1097_vm12, %v1638_v31, %v1628_v21 }
 0x3dc   : > { %v1102_v36 = vsel %vm1097_vm12, %v1642_v35, %v1617_v6  ;;  %v1103_v37 = vsel %vm1097_vm12, %v1643_v33, %v1618_v5  ;;  %v1651_v38 = vpop.permute.xlu0 %1650  ;;  %v1205_v57 = vpack.c.bf16 %v1105_v47, %v1104_v14 }
 0x3dd   : > { %v1203_v40 = vpack.c.bf16 %v1103_v37, %v1102_v36  ;;  %v1653_v41 = vunpack.i.h.bf16 %v1651_v38  ;;  %v1652_v42 = vunpack.i.l.bf16 %v1651_v38  ;;  %v1646_v45 = vpop.permute.xlu1 %1645 }
 0x3de   : > { %v1648_v50 = vunpack.i.h.bf16 %v1646_v45  ;;  %v1647_v51 = vunpack.i.l.bf16 %v1646_v45 }
 0x3df   : > { %1247 = vmatpush1.bf16.msra.mxu0 %v1203_v40 }
 0x3e0   : > { %v1656_v54 = vpop.permute.xlu0 %1655  ;;  %1248 = vmatprep.subr.bf16.mxu0 %v1206_v46  ;;  %v1130_v55 = vsel %vm754_vm4, %v1647_v51, %v1652_v42  ;;  %v1131_v56 = vsel %vm754_vm4, %v1648_v50, %v1653_v41 }
 0x3e1   : > { %v1661_v58 = vpop.permute.xlu1 %1660  ;;  %v1208_v59 = vpack.c.bf16 %v1131_v56, %v1130_v55  ;;  %v1658_v62 = vunpack.i.h.bf16 %v1656_v54  ;;  %v1657_v0 = vunpack.i.l.bf16 %v1656_v54 }
 0x3e2   : > { %v1663_v60 = vunpack.i.h.bf16 %v1661_v58  ;;  %v1662_v61 = vunpack.i.l.bf16 %v1661_v58 }
 0x3e3   : > { %1249 = vmatpush1.bf16.msra.mxu0 %v1205_v57 }
 0x3e4   : > { %v1134_v63 = vsel %vm754_vm4, %v1662_v61, %v1647_v51  ;;  %v1135_v2 = vsel %vm754_vm4, %v1663_v60, %v1648_v50  ;;  %v1671_v3 = vpop.permute.xlu0 %1670  ;;  %1250 = vmatprep.subr.bf16.mxu0 %v1208_v59 }
 0x3e5   : > { %v1207_v4 = vpack.c.bf16 %v1135_v2, %v1134_v63  ;;  %v1673_v5 = vunpack.i.h.bf16 %v1671_v3  ;;  %v1672_v6 = vunpack.i.l.bf16 %v1671_v3  ;;  %v1666_v7 = vpop.permute.xlu1 %1665 }
 0x3e6   : > { %v1668_v9 = vunpack.i.h.bf16 %v1666_v7  ;;  %v1667_v10 = vunpack.i.l.bf16 %v1666_v7 }
 0x3e7   : > { %v1136_v12 = vsel %vm754_vm4, %v1672_v6, %v1657_v0  ;;  %v1137_v13 = vsel %vm754_vm4, %v1673_v5, %v1658_v62  ;;  %1251 = vmatpush1.bf16.msra.mxu0 %v1207_v4 }
 0x3e8   : > { %v1686_v15 = vpop.permute.xlu0 %1685  ;;  %v1132_v16 = vsel %vm754_vm4, %v1657_v0, %v1667_v10  ;;  %v1133_v21 = vsel %vm754_vm4, %v1658_v62, %v1668_v9  ;;  %v1209_v24 = vpack.c.bf16 %v1137_v13, %v1136_v12 }
 0x3e9   : > { %v1676_v22 = vpop.permute.xlu1 %1675  ;;  %v1210_v23 = vpack.c.bf16 %v1133_v21, %v1132_v16  ;;  %v1688_v38 = vunpack.i.h.bf16 %v1686_v15  ;;  %v1687_v19 = vunpack.i.l.bf16 %v1686_v15 }
 0x3ea   : > { %v1678_v30 = vunpack.i.h.bf16 %v1676_v22  ;;  %v1677_v31 = vunpack.i.l.bf16 %v1676_v22 }
 0x3eb   : > { %1252 = vmatprep.subr.bf16.mxu0 %v1210_v23  ;;  %v1737_v23 = vld [vmem:[%s2351_s10] ss:$8 sps:$4 sm:$0xff]  }
 0x3ec   : > { %v1696_v25 = vpop.permute.xlu0 %1695  ;;  %1253 = vmatpush1.bf16.msra.mxu0 %v1209_v24 }
 0x3ed   : > { %v1698_v27 = vunpack.i.h.bf16 %v1696_v25  ;;  %v1697_v28 = vunpack.i.l.bf16 %v1696_v25  ;;  %v1681_v29 = vpop.permute.xlu1 %1680  ;;  %1254 = vmatprep.subr.bf16.mxu0 %v1212_v39 }
 0x3ee   : > { %v1682_v32 = vunpack.i.l.bf16 %v1681_v29  ;;  %v1683_v33 = vunpack.i.h.bf16 %v1681_v29 }
 0x3ef   : > { %v1162_v36 = vsel %vm773_vm5, %v1677_v31, %v1697_v28  ;;  %v1163_v37 = vsel %vm773_vm5, %v1678_v30, %v1698_v27 }
 0x3f0   : > { %v1701_v35 = vpop.permute.xlu0 %1700  ;;  %1255 = vmatpush1.bf16.msra.mxu0 %v1211_v43  ;;  %v1166_v20 = vsel %vm773_vm5, %v1682_v32, %v1677_v31  ;;  %v1167_v17 = vsel %vm773_vm5, %v1683_v33, %v1678_v30  ;;  %v1216_v42 = vpack.c.bf16 %v1163_v37, %v1162_v36  ;;  %v1301_v37 = vld [vmem:[#allocation2] sm:$0xff] }
 0x3f1   : > { %v1691_v40 = vpop.permute.xlu1 %1690  ;;  %1256 = vmatprep.subr.bf16.mxu0 %v1214_v26  ;;  %v1703_v18 = vunpack.i.h.bf16 %v1701_v35  ;;  %v1702_v43 = vunpack.i.l.bf16 %v1701_v35  ;;  %v1215_v47 = vpack.c.bf16 %v1167_v17, %v1166_v20 }
 0x3f2   : > { %v1693_v39 = vunpack.i.h.bf16 %v1691_v40  ;;  %v1692_v41 = vunpack.i.l.bf16 %v1691_v40 }
 0x3f3   : > { %v1168_v54 = vsel %vm773_vm5, %v1702_v43, %v1687_v19  ;;  %v1169_v48 = vsel %vm773_vm5, %v1703_v18, %v1688_v38 }
 0x3f4   : > { %v1716_v45 = vpop.permute.xlu0 %1715  ;;  %1257 = vmatpush1.bf16.msra.mxu0 %v1213_v1  ;;  %v1164_v52 = vsel %vm773_vm5, %v1687_v19, %v1692_v41  ;;  %v1165_v53 = vsel %vm773_vm5, %v1688_v38, %v1693_v39  ;;  %v1217_v58 = vpack.c.bf16 %v1169_v48, %v1168_v54  ;;  %v1302_v38 = vld [vmem:[#allocation2 + $0x8] sm:$0xff]  ;;  %v1741_v39 = vpop.eup %1740 }
 0x3f5   : > { %v1718_v26 = vunpack.i.h.bf16 %v1716_v45  ;;  %v1717_v46 = vunpack.i.l.bf16 %v1716_v45  ;;  %v1706_v14 = vpop.permute.xlu1 %1705  ;;  %1258 = vmatprep.subr.bf16.mxu0 %v1216_v42  ;;  %v1218_v49 = vpack.c.bf16 %v1165_v53, %v1164_v52  ;;  %v1292_v42 = vld [vmem:[%s2353_s12 + $0x8] sm:$0xff] }
 0x3f6   : > { %v1708_v50 = vunpack.i.h.bf16 %v1706_v14  ;;  %v1707_v51 = vunpack.i.l.bf16 %v1706_v14 }
 0x3f8   : > { %v1721_v1 = vpop.permute.xlu0 %1720  ;;  %1259 = vmatpush1.bf16.msra.mxu0 %v1215_v47  ;;  %v1195_v55 = vsel %vm1194_vm13, %v1707_v51, %v1717_v46  ;;  %v1196_v56 = vsel %vm1194_vm13, %v1708_v50, %v1718_v26 }
 0x3f9   : > { %v1711_v57 = vpop.permute.xlu1 %1710  ;;  %1260 = vmatprep.subr.bf16.mxu0 %v1218_v49  ;;  %v1220_v61 = vpack.c.bf16 %v1196_v56, %v1195_v55  ;;  %v1723_v62 = vunpack.i.h.bf16 %v1721_v1  ;;  %v1722_v0 = vunpack.i.l.bf16 %v1721_v1  ;;  %v1293_v49 = vld [vmem:[%s2354_s13] sm:$0x1] }
 0x3fa   : > { %v1713_v59 = vunpack.i.h.bf16 %v1711_v57  ;;  %v1712_v60 = vunpack.i.l.bf16 %v1711_v57 }
 0x3fc   : > { %v1199_v63 = vsel %vm1194_vm13, %v1712_v60, %v1707_v51  ;;  %v1200_v2 = vsel %vm1194_vm13, %v1713_v59, %v1708_v50  ;;  %v1731_v3 = vpop.permute.xlu0 %1730  ;;  %1261 = vmatpush1.bf16.msra.mxu0 %v1217_v58 }
 0x3fd   : > { %v1219_v4 = vpack.c.bf16 %v1200_v2, %v1199_v63  ;;  %v1733_v5 = vunpack.i.h.bf16 %v1731_v3  ;;  %v1732_v6 = vunpack.i.l.bf16 %v1731_v3  ;;  %v1726_v7 = vpop.permute.xlu1 %1725  ;;  %1262 = vmatprep.subr.bf16.mxu0 %v1220_v61 }
 0x3fe   : > { %v1728_v9 = vunpack.i.h.bf16 %v1726_v7  ;;  %v1727_v10 = vunpack.i.l.bf16 %v1726_v7 }
 0x3ff   : > { %v1201_v12 = vsel %vm1194_vm13, %v1732_v6, %v1722_v0  ;;  %v1202_v13 = vsel %vm1194_vm13, %v1733_v5, %v1723_v62 }
 0x400   : > { %1263 = vmatpush1.bf16.msra.mxu0 %v1219_v4  ;;  %v1197_v15 = vsel %vm1194_vm13, %v1722_v0, %v1727_v10  ;;  %v1198_v16 = vsel %vm1194_vm13, %v1723_v62, %v1728_v9  ;;  %v1221_v22 = vpack.c.bf16 %v1202_v13, %v1201_v12 }
 0x401   : > { %v1222_v21 = vpack.c.bf16 %v1198_v16, %v1197_v15 }
 0x403   : > { %1264 = vmatprep.subr.bf16.mxu0 %v1222_v21 }
 0x404   : > { %1265 = vmatpush1.bf16.msra.mxu0 %v1221_v22 }
 0x407   : > { %1279 = vmatmul.mubr.bf16.vlgmr.msra.gmra.mrb[8].mxu0 %v1737_v23 }
 0x40d   : > { %v1231_v29 = vpop.permute.xlu0 %1230 }
 0x40e   : > { %v1226_v25 = vpop.permute.xlu1 %1225 }
 0x4da   : > { %v1280_v24 = vpop.f32.mrb[8].mxu0 }
 0x4db   : > { %v1281_v11 = vpop.f32.mrb[9].mxu0 }
 0x4dc   : > { %v1282_v27 = vadd.f32 %v1281_v11, %v1226_v25  ;;  %v1283_v28 = vpop.f32.mrb[10].mxu0 }
 0x4dd   : > { %v1284_v30 = vpop.f32.mrb[11].mxu0 }
 0x4de   : > { %v1287_v31 = vmax.f32 %v1282_v27, 0.0  ;;  %v1285_v32 = vadd.f32 %v1284_v30, %v1231_v29 }
 0x4e0   : > { %v1288_v33 = vmax.f32 %v1285_v32, 0.0  ;;  %v1289_v35 = vmul.f32 %v2105_v44, %v1287_v31 }
 0x4e2   : > { %1303 = vadd.xlane.f32.xlu1 %v1289_v35  ;;  %v1290_v36 = vmul.f32 %v2105_v44, %v1288_v33 }
 0x4e4   : > { %1305 = vadd.xlane.f32.xlu0 %v1290_v36 }
 0x56f   : > { %v1304_v8 = vpop.xlane.xlu1 %1303 }
 0x570   : > { %v1307_v40 = vadd.f32 %v1304_v8, %v1301_v37 }
 0x571   : > { %v1306_v19 = vpop.xlane.xlu0 %1305 }
 0x572   : > { %1310 = vst.msk [vmem:[#allocation2] sm:$0xff] %vm1298_vm14, %v1307_v40  ;;  %v1308_v20 = vadd.f32 %v1306_v19, %v1302_v38 }
 0x574   : > { %1311 = vst.msk [vmem:[#allocation2 + $0x8] sm:$0xff] %vm1298_vm14, %v1308_v20 }
 0x579   : > { %v1315_v41 = vld [vmem:[#allocation2] sm:$0xff] }
 0x57a   : > { %v1318_v17 = vmul.f32 %v1741_v39, %v1315_v41 }
 0x57b   : > { %v1316_v18 = vld [vmem:[#allocation2 + $0x8] sm:$0xff] }
 0x57c   : > { %1322 = vperm.xlu0 %1582, %v1318_v17   ;;  %v1319_v44 = vmul.f32 %v1741_v39, %v1316_v18 }
 0x57e   : > { %1327 = vperm.xlu1 %1613, %v1319_v44  }
 0x5fb   : > { %v1323_v43 = vpop.permute.xlu0 %1322 }
 0x5fc   : > { %v1330_v45 = vmul.f32 %v1323_v43, %v1291_v34 }
 0x5fd   : > { %v1328_v52 = vpop.permute.xlu1 %1327 }
 0x5fe   : > { %v1331_v53 = vmul.f32 %v1328_v52, %v1292_v42  ;;  %v1333_v26 = vsel %vm1332_vm15, %v1330_v45, 0.0 }
 0x600   : > { %v1334_v46 = vsel %vm1332_vm15, %v1331_v53, 0.0 }
 0x601   : > { %v1335_v14 = vadd.f32 %v1334_v46, %v1333_v26 }
 0x603   : > { %v1336_v47 = vrot.slane %v1335_v14, 4 }
 0x605   : > { %v1337_v50 = vadd.f32 %v1336_v47, %v1335_v14 }
 0x607   : > { %v1338_v51 = vrot.slane %v1337_v50, 2 }
 0x609   : > { %v1339_v54 = vadd.f32 %v1338_v51, %v1337_v50 }
 0x60b   : > { %v1340_v48 = vrot.slane %v1339_v54, 1 }
 0x60d   : > { %v1341_v1 = vadd.f32 %v1340_v48, %v1339_v54 }
 0x60f   : > { %v1342_v55 = vadd.f32 %v1341_v1, %v1293_v49 }
 0x611   : > { %1344 = vst.msk [vmem:[%s529_s30] sm:$0x1] %vm1343_vm0, %v1342_v55 }
 0x612   : > { %1767 = shalt.err (!%p1764_p10)
}
 0x613   : > { %s1768_s17 = scalar_lea.hbm %s2294_s15, 16  ;;  %s1772_s30 = scalar_lea.hbm %s2355_s14, 32 }
 0x614   : > { %p1769_p11 = scmp.ne.s32.totalorder %s2294_s15, %s1768_s17  ;;  %p1773_p1 = scmp.lt.u32.totalorder %s2294_s15, %s2355_s14 }
 0x615   : > { %p1774_p2 = scmp.lt.u32.totalorder %s1772_s30, %s1768_s17  ;;  %p1776_p4 = scmp.lt.u32.totalorder %s1768_s17, %s2294_s15 }
 0x616   : > { %p1770_p12 = pnand %p1769_p11, %p1963_p9 }
 0x617   : > { %p1775_p3 = por %p1774_p2, %p1773_p1 }
 0x618   : > { %p1771_p0 = pneg %p1770_p12 }
 0x619   : > { %p1777_p5 = por %p1776_p4, %p1775_p3 }
 0x61b   : > { %p1778_p6 = pnand %p1777_p5, %p1771_p0 }
 0x61d   : > { %1781 = shalt.err (!%p1778_p6)
}
 0x61e   : > { %1519 = dma.vmem_to_hbm [thread:$0]  (%p1963_p9), %s2296_s21, 16, %s2294_s15, %s1346_s16  }
 0x61f PF: > { %p1525_p7 = scmp.ge.s32.totalorder %s1834_s22, 2  ;;  %s1370_s20 = sand.u32 1, %s1814_s18  }
 0x620   : > { %s1371_s24 = scalar_lea.sflag [#allocation6], %s1370_s20 }
 0x621   : > { %p1522_p8 = pnand %p1525_p7, %p1970_p13 }
 0x623   : > { %1809 = dma.done.wait (!%p1522_p8), %s1371_s24, 16  }
 0x624   : > { %1811 = vsyncadd (!%p1522_p8), %s1371_s24, 4294967280  ;;  %s33_s22 = sadd.s32 1, %s1834_s22   ;;  %s2368_s25 = sld [smem:[#allocation9_spill]] }
 0x625   : > { %p30_p10 = scmp.ge.s32.totalorder %s33_s22, 4   ;;  %s2369_s0 = sld [smem:[#allocation13_spill]] }
 0x626   : > { %s2370_s20 = sld [smem:[#allocation10_spill]]  ;;  %s2371_s21 = sld [smem:[#allocation11_spill]] }
 0x627   : > { %s2372_s18 = smov %s1818_s19  ;;  %32 = sbr.rel (!%p30_p10) target bundleno = 19 (0x13), region = 121 }
 0x62a   : > { %s2373_s19 = smov %s2368_s25 }
 0x62e   :  { %1375 = vsyncpa [#allocation6], 1 }
 0x62f   :  { %1377 = vsyncpa [#allocation6 + $0x1], 1 }

</bundles_post_ra>
